<compile_context>
chip_gen: v7x
topology: tpu7x:2x2x1
jax: 0.10.0
libtpu: 0.0.40
codegen_flags: <defaults>
</compile_context>

<pallas_src>
import jax
import jax.numpy as jnp
from jax.experimental import pallas as pl
from jax.experimental.pallas import tpu as pltpu


def _round_up(n, m):
    return ((n + m - 1) // m) * m


def reward_mlp_kernel(x_ref, w1_ref, b1_ref, w2_ref, b2_ref, w3_ref, b3_ref, o_ref):
    x = x_ref[...]                                   # [TILE_B, D]  bf16

    # Layer 1: Linear(D, 128) + ReLU  (bf16 MXU matmul, f32 accumulate / bias / ReLU)
    h1 = jnp.dot(x, w1_ref[...], preferred_element_type=jnp.float32) + b1_ref[...]
    h1 = jnp.maximum(h1, 0.0)

    # Layer 2: Linear(128, 128) + ReLU
    h2 = jnp.dot(h1.astype(jnp.bfloat16), w2_ref[...],
                 preferred_element_type=jnp.float32) + b2_ref[...]
    h2 = jnp.maximum(h2, 0.0)

    # Layer 3: Linear(128, 1) + Sigmoid.
    # out_features == 1 -> skip the MXU (1/256 column utilization) and use
    # VPU multiply + XLU lane reduction instead. w3_ref is [1, 128] f32.
    z = jnp.sum(h2 * w3_ref[...], axis=-1, keepdims=True) + b3_ref[0, 0]
    o_ref[...] = jax.nn.sigmoid(z)


def reward_network_forward(x, params, tile_b=512):
    """x: [B, D] float32. params: dict of w1,b1,w2,b2,w3,b3 (weights [in, out])."""
    B, D = x.shape

    # bf16 for the big operands; biases / scalars stay f32.
    w1 = params["w1"].astype(jnp.bfloat16)                     # [D, 128]
    b1 = params["b1"].astype(jnp.float32)                      # [1, 128]
    w2 = params["w2"].astype(jnp.bfloat16)                     # [128, 128]
    b2 = params["b2"].astype(jnp.float32)                      # [1, 128]
    w3 = params["w3"].reshape(1, 128).astype(jnp.float32)      # [1, 128] (VPU path)
    b3 = params["b3"].reshape(1, 1).astype(jnp.float32)        # [1, 1] scalar -> SMEM

    # Batch tile: cap at tile_b (multiple of 256 for v6e/v7x MXU); keep the bf16
    # second-minor block dim a multiple of 16 for small batches, then pad B.
    tb = min(tile_b, _round_up(B, 16))
    b_pad = _round_up(B, tb)
    x_in = x.astype(jnp.bfloat16)
    if b_pad != B:
        x_in = jnp.pad(x_in, ((0, b_pad - B), (0, 0)))
    nb = b_pad // tb

    def const_spec(shape):
        # Weights/biases: same block every grid step -> stay resident in VMEM.
        return pl.BlockSpec(shape, lambda i: (0,) * len(shape))

    # TODO(synk): if input_dim grows large (>~1K), add a K grid axis ("arbitrary", last)
    # tiling D for layer 1 and set vmem_limit_bytes for the v7x 64 MiB VMEM budget.
    out = pl.pallas_call(
        reward_mlp_kernel,
        out_shape=jax.ShapeDtypeStruct((b_pad, 1), jnp.float32),
        grid=(nb,),
        in_specs=[
            pl.BlockSpec((tb, D), lambda i: (i, 0)),                 # x: streamed over batch
            const_spec(w1.shape), const_spec(b1.shape),
            const_spec(w2.shape), const_spec(b2.shape),
            const_spec(w3.shape),
            pl.BlockSpec(memory_space=pltpu.MemorySpace.SMEM),       # b3 scalar
        ],
        out_specs=pl.BlockSpec((tb, 1), lambda i: (i, 0)),
        compiler_params=pltpu.CompilerParams(
            dimension_semantics=("parallel",),                       # shards batch on v7x megacore
        ),
    )(x_in, w1, b1, w2, b2, w3, b3)

    return out[:B]


def init_params(input_dim, key):
    """Deterministic init mimicking PyTorch nn.Linear default (U[-1/sqrt(fan_in), 1/sqrt(fan_in)]).
    Weights stored as [in_features, out_features] (transpose of PyTorch layout)."""
    ks = jax.random.split(key, 6)

    def linear(kw, kb, fan_in, fan_out):
        bound = 1.0 / jnp.sqrt(fan_in)
        w = jax.random.uniform(kw, (fan_in, fan_out), jnp.float32, -bound, bound)
        b = jax.random.uniform(kb, (1, fan_out), jnp.float32, -bound, bound)
        return w, b

    w1, b1 = linear(ks[0], ks[1], input_dim, 128)
    w2, b2 = linear(ks[2], ks[3], 128, 128)
    w3, b3 = linear(ks[4], ks[5], 128, 1)
    return {"w1": w1, "b1": b1, "w2": w2, "b2": b2, "w3": w3, "b3": b3}


if __name__ == "__main__":
    key = jax.random.PRNGKey(0)
    k_x, k_p = jax.random.split(key)

    B, D = 8, 32  # small shapes: batch=8, input_dim=32
    x = jax.random.normal(k_x, (B, D), dtype=jnp.float32)
    params = init_params(D, k_p)

    out = reward_network_forward(x, params)
    out = jax.block_until_ready(out)

    # Reference in plain JAX with the same bf16-input / f32-accumulate math.
    xb = x.astype(jnp.bfloat16)
    w1b = params["w1"].astype(jnp.bfloat16)
    w2b = params["w2"].astype(jnp.bfloat16)
    h1 = jnp.maximum(jnp.dot(xb, w1b, preferred_element_type=jnp.float32) + params["b1"], 0.0)
    h2 = jnp.maximum(jnp.dot(h1.astype(jnp.bfloat16), w2b,
                             preferred_element_type=jnp.float32) + params["b2"], 0.0)
    ref = jax.nn.sigmoid(h2 @ params["w3"] + params["b3"])

    assert out.shape == (B, 1)
    assert jnp.allclose(out, ref, atol=2e-3), "mismatch vs reference"

    print("KERNEL_OK")
</pallas_src>

<mosaic_0001>
module attributes {stable_mosaic.version = 11 : i64} {
  func.func @reward_mlp_kernel(%arg0: i32, %arg1: memref<16x32xbf16, #tpu.memory_space<vmem>>, %arg2: memref<32x128xbf16, #tpu.memory_space<vmem>>, %arg3: memref<1x128xf32, #tpu.memory_space<vmem>>, %arg4: memref<128x128xbf16, #tpu.memory_space<vmem>>, %arg5: memref<1x128xf32, #tpu.memory_space<vmem>>, %arg6: memref<1x128xf32, #tpu.memory_space<vmem>>, %arg7: memref<1x1xf32, #tpu.memory_space<smem>>, %arg8: memref<16x1xf32, #tpu.memory_space<vmem>>) attributes {dimension_semantics = [#tpu.dimension_semantics<parallel>], iteration_bounds = array<i64: 1>, scalar_prefetch = 0 : i64, scratch_operands = 0 : i64, tpu.core_type = #tpu.core_type<tc>, window_params = [{transform_indices = @transform_0, window_bounds = array<i64: 16, 32>}, {pipeline_mode = #tpu.pipeline_mode<synchronous>, transform_indices = @transform_1, window_bounds = array<i64: 32, 128>}, {pipeline_mode = #tpu.pipeline_mode<synchronous>, transform_indices = @transform_2, window_bounds = array<i64: 1, 128>}, {pipeline_mode = #tpu.pipeline_mode<synchronous>, transform_indices = @transform_3, window_bounds = array<i64: 128, 128>}, {pipeline_mode = #tpu.pipeline_mode<synchronous>, transform_indices = @transform_4, window_bounds = array<i64: 1, 128>}, {pipeline_mode = #tpu.pipeline_mode<synchronous>, transform_indices = @transform_5, window_bounds = array<i64: 1, 128>}, {transform_indices = @transform_6, window_bounds = array<i64: 1, 1>}, {transform_indices = @transform_7, window_bounds = array<i64: 16, 1>}]} {
    %c0 = arith.constant 0 : index
    %c0_0 = arith.constant 0 : index
    %0 = vector.load %arg1[%c0, %c0_0] : memref<16x32xbf16, #tpu.memory_space<vmem>>, vector<16x32xbf16>
    %c0_1 = arith.constant 0 : index
    %c0_2 = arith.constant 0 : index
    %1 = vector.load %arg2[%c0_1, %c0_2] : memref<32x128xbf16, #tpu.memory_space<vmem>>, vector<32x128xbf16>
    %cst = arith.constant dense<0.000000e+00> : vector<16x128xf32>
    %2 = tpu.matmul %0, %1, %cst {dimension_numbers = #tpu.dot_dimension_numbers<[1], [0], [0], [1], [0, 0, 1, 1], [], []>} : vector<16x32xbf16>, vector<32x128xbf16>, vector<16x128xf32> -> vector<16x128xf32>
    %c0_3 = arith.constant 0 : index
    %c0_4 = arith.constant 0 : index
    %3 = vector.load %arg3[%c0_3, %c0_4] : memref<1x128xf32, #tpu.memory_space<vmem>>, vector<1x128xf32>
    %4 = vector.broadcast %3 : vector<1x128xf32> to vector<16x128xf32>
    %5 = arith.addf %2, %4 : vector<16x128xf32>
    %cst_5 = arith.constant 0.000000e+00 : f32
    %6 = vector.broadcast %cst_5 : f32 to vector<16x128xf32>
    %7 = arith.maximumf %5, %6 : vector<16x128xf32>
    %8 = arith.truncf %7 : vector<16x128xf32> to vector<16x128xbf16>
    %c0_6 = arith.constant 0 : index
    %c0_7 = arith.constant 0 : index
    %9 = vector.load %arg4[%c0_6, %c0_7] : memref<128x128xbf16, #tpu.memory_space<vmem>>, vector<128x128xbf16>
    %cst_8 = arith.constant dense<0.000000e+00> : vector<16x128xf32>
    %10 = tpu.matmul %8, %9, %cst_8 {dimension_numbers = #tpu.dot_dimension_numbers<[1], [0], [0], [1], [0, 0, 1, 1], [], []>} : vector<16x128xbf16>, vector<128x128xbf16>, vector<16x128xf32> -> vector<16x128xf32>
    %c0_9 = arith.constant 0 : index
    %c0_10 = arith.constant 0 : index
    %11 = vector.load %arg5[%c0_9, %c0_10] : memref<1x128xf32, #tpu.memory_space<vmem>>, vector<1x128xf32>
    %12 = vector.broadcast %11 : vector<1x128xf32> to vector<16x128xf32>
    %13 = arith.addf %10, %12 : vector<16x128xf32>
    %cst_11 = arith.constant 0.000000e+00 : f32
    %14 = vector.broadcast %cst_11 : f32 to vector<16x128xf32>
    %15 = arith.maximumf %13, %14 : vector<16x128xf32>
    %c0_12 = arith.constant 0 : index
    %c0_13 = arith.constant 0 : index
    %16 = vector.load %arg6[%c0_12, %c0_13] : memref<1x128xf32, #tpu.memory_space<vmem>>, vector<1x128xf32>
    %17 = vector.broadcast %16 : vector<1x128xf32> to vector<16x128xf32>
    %18 = arith.mulf %15, %17 : vector<16x128xf32>
    %cst_14 = arith.constant dense<0.000000e+00> : vector<16xf32>
    %19 = vector.multi_reduction <add>, %18, %cst_14 [1] : vector<16x128xf32> to vector<16xf32>
    %20 = vector.shape_cast %19 : vector<16xf32> to vector<16x1xf32>
    %c0_15 = arith.constant 0 : index
    %c0_16 = arith.constant 0 : index
    %21 = memref.load %arg7[%c0_15, %c0_16] : memref<1x1xf32, #tpu.memory_space<smem>>
    %22 = vector.broadcast %21 : f32 to vector<16x1xf32>
    %23 = arith.addf %20, %22 : vector<16x1xf32>
    %24 = arith.negf %23 : vector<16x1xf32>
    %25 = math.exp %24 : vector<16x1xf32>
    %cst_17 = arith.constant 1.000000e+00 : f32
    %26 = vector.broadcast %cst_17 : f32 to vector<16x1xf32>
    %27 = arith.addf %26, %25 : vector<16x1xf32>
    %28 = arith.divf %26, %27 : vector<16x1xf32>
    %c0_18 = arith.constant 0 : index
    %c0_19 = arith.constant 0 : index
    %29 = vector.load %arg8[%c0_18, %c0_19] : memref<16x1xf32, #tpu.memory_space<vmem>>, vector<16x1xf32>
    tpu.vector_store %arg8[%c0_18, %c0_19], %28 {strides = array<i32>} : memref<16x1xf32, #tpu.memory_space<vmem>>, vector<16x1xf32>,
    return
  }
  func.func @transform_0(%arg0: i32) -> (i32, i32) {
    %c0_i32 = arith.constant 0 : i32
    %c0_i32_0 = arith.constant 0 : i32
    return %arg0, %c0_i32 : i32, i32
  }
  func.func @transform_1(%arg0: i32) -> (i32, i32) {
    %c0_i32 = arith.constant 0 : i32
    %c0_i32_0 = arith.constant 0 : i32
    %c0_i32_1 = arith.constant 0 : i32
    return %c0_i32, %c0_i32_0 : i32, i32
  }
  func.func @transform_2(%arg0: i32) -> (i32, i32) {
    %c0_i32 = arith.constant 0 : i32
    %c0_i32_0 = arith.constant 0 : i32
    %c0_i32_1 = arith.constant 0 : i32
    return %c0_i32, %c0_i32_0 : i32, i32
  }
  func.func @transform_3(%arg0: i32) -> (i32, i32) {
    %c0_i32 = arith.constant 0 : i32
    %c0_i32_0 = arith.constant 0 : i32
    %c0_i32_1 = arith.constant 0 : i32
    return %c0_i32, %c0_i32_0 : i32, i32
  }
  func.func @transform_4(%arg0: i32) -> (i32, i32) {
    %c0_i32 = arith.constant 0 : i32
    %c0_i32_0 = arith.constant 0 : i32
    %c0_i32_1 = arith.constant 0 : i32
    return %c0_i32, %c0_i32_0 : i32, i32
  }
  func.func @transform_5(%arg0: i32) -> (i32, i32) {
    %c0_i32 = arith.constant 0 : i32
    %c0_i32_0 = arith.constant 0 : i32
    %c0_i32_1 = arith.constant 0 : i32
    return %c0_i32, %c0_i32_0 : i32, i32
  }
  func.func @transform_6(%arg0: i32) -> (i32, i32) {
    %c0_i32 = arith.constant 0 : i32
    %c0_i32_0 = arith.constant 0 : i32
    %c0_i32_1 = arith.constant 0 : i32
    return %c0_i32, %c0_i32_0 : i32, i32
  }
  func.func @transform_7(%arg0: i32) -> (i32, i32) {
    %c0_i32 = arith.constant 0 : i32
    %c0_i32_0 = arith.constant 0 : i32
    return %arg0, %c0_i32 : i32, i32
  }
}

</mosaic_0001>

<bundles_post_ra>
// kernel: tpu_custom_call.1
= control target key start
LH: loop header
LB: loop body
LE: loop exit
PB: predicated region body
PF: predicated region fallthrough
CT: control target
= control target key end

     0   :  { %13 = vsyncpa [#allocation4], 0  ;;  %s569_s0 = inlined_call_operand.hbm [shape: bf16[16,32], index: 0, kind: input, shape index: {}]   ;;  %s570_s1 = inlined_call_operand.hbm [shape: bf16[32,128], index: 1, kind: input, shape index: {}]   ;;  %s571_s2 = inlined_call_operand.vmem [shape: f32[1,128], index: 2, kind: input, shape index: {}]   ;;  %s572_s3 = inlined_call_operand.hbm [shape: bf16[128,128], index: 3, kind: input, shape index: {}]   ;;  %s573_s4 = inlined_call_operand.vmem [shape: f32[1,128], index: 4, kind: input, shape index: {}]   ;;  %s574_s5 = inlined_call_operand.vmem [shape: f32[1,128], index: 5, kind: input, shape index: {}]   ;;  %s575_s6 = inlined_call_operand.<no memory space> [shape: f32[1,1], index: 6, kind: input, shape index: {}]   ;;  %s576_s7 = inlined_call_operand.vmem [shape: f32[16,1], index: 7, kind: output, shape index: {}]  }
   0x1   :  { %14 = vsyncpa [#allocation6], 0  ;;  %s452_s24 = smov [#allocation5]   ;;  %s453_s26 = smov [#allocation3]  }
   0x2   :  { %s32_s25 = sshll.u32 %s452_s24, 4  ;;  %s20_s27 = sshll.u32 %s453_s26, 4  ;;  %s33_s25 = int_to_ptr.vmem [resolvable:$true] %s32_s25  ;;  %s499_s27 = int_to_ptr.vmem [resolvable:$true] %s20_s27 }
   0x3   :  { %s382_s30 = scalar_lea.hbm %s570_s1, 256 }
   0x4   :  { %p383_p0 = scmp.ne.s32.totalorder %s570_s1, %s382_s30  ;;  %p386_p1 = scmp.lt.u32.totalorder %s382_s30, %s570_s1 }
   0x6   :  { %p388_p2 = pnand %p386_p1, %p383_p0 }
   0x8   :  { %391 = shalt.err (!%p388_p2)
}
   0x9   :  { %s392_s12 = scalar_lea.vmem %s33_s25, 256  ;;  %p397_p4 = scmp.lt.s32.totalorder %s33_s25, %s33_s25 }
   0xa   :  { %p393_p3 = scmp.ne.s32.totalorder %s33_s25, %s392_s12  ;;  %p398_p5 = scmp.lt.s32.totalorder %s392_s12, %s392_s12 }
   0xc   :  { %p399_p6 = por %p398_p5, %p397_p4 }
   0xe   :  { %p400_p7 = pnand %p399_p6, %p393_p3 }
  0x10   :  { %403 = shalt.err (!%p400_p7)
}
  0x11   :  { %s454_s13 = smov 64   ;;  %s455_s14 = smov 4  }
  0x12   :  { %38 = dma.hbm_to_vmem [thread:$0]  %s570_s1, 256, %s33_s25, [#allocation6], %s454_s13, %s454_s13, %s455_s14  }
  0x13   :  { %s404_s19 = scalar_lea.hbm %s569_s0, 128 }
  0x14   :  { %p405_p8 = scmp.ne.s32.totalorder %s569_s0, %s404_s19  ;;  %p408_p9 = scmp.lt.u32.totalorder %s404_s19, %s569_s0 }
  0x16   :  { %p410_p10 = pnand %p408_p9, %p405_p8 }
  0x18   :  { %413 = shalt.err (!%p410_p10)
}
  0x19   :  { %s414_s24 = scalar_lea.vmem %s499_s27, 128  ;;  %p419_p12 = scmp.lt.s32.totalorder %s499_s27, %s499_s27 }
  0x1a   :  { %p415_p11 = scmp.ne.s32.totalorder %s499_s27, %s414_s24  ;;  %p420_p13 = scmp.lt.s32.totalorder %s414_s24, %s414_s24 }
  0x1c   :  { %p421_p0 = por %p420_p13, %p419_p12 }
  0x1e   :  { %p422_p1 = pnand %p421_p0, %p415_p11 }
  0x20   :  { %425 = shalt.err (!%p422_p1)
}
  0x21   :  { %26 = dma.hbm_to_vmem [thread:$0]  %s569_s0, 128, %s499_s27, [#allocation4], %s454_s13, %s454_s13, %s455_s14  }
  0x22   :  { %s456_s26 = smov [#allocation7]   ;;  %s426_s8 = scalar_lea.hbm %s572_s3, 1024 }
  0x23   :  { %s46_s28 = sshll.u32 %s456_s26, 4  ;;  %p427_p2 = scmp.ne.s32.totalorder %s572_s3, %s426_s8  ;;  %s47_s28 = int_to_ptr.vmem [resolvable:$true] %s46_s28 }
  0x24   :  { %p430_p3 = scmp.lt.u32.totalorder %s426_s8, %s572_s3 }
  0x26   :  { %p432_p4 = pnand %p430_p3, %p427_p2 }
  0x28   :  { %435 = shalt.err (!%p432_p4)
}
  0x29   :  { %s436_s15 = scalar_lea.vmem %s47_s28, 1024  ;;  %p441_p6 = scmp.lt.s32.totalorder %s47_s28, %s47_s28 }
  0x2a   :  { %p437_p5 = scmp.ne.s32.totalorder %s47_s28, %s436_s15  ;;  %p442_p7 = scmp.lt.s32.totalorder %s436_s15, %s436_s15 }
  0x2c   :  { %p443_p8 = por %p442_p7, %p441_p6 }
  0x2e   :  { %p444_p9 = pnand %p443_p8, %p437_p5 }
  0x30   :  { %447 = shalt.err (!%p444_p9)
}
  0x31   :  { %52 = dma.hbm_to_vmem [thread:$0]  %s572_s3, 1024, %s47_s28, [#allocation6], %s454_s13, %s454_s13, %s455_s14  }
  0x32   :  { %448 = dma.done.wait [#allocation4], 128  }
  0x33   :  { %449 = vsyncadd [#allocation4], 4294967168 }
  0x34   :  { %450 = dma.done.wait [#allocation6], 1280  }
  0x35   :  { %451 = vsyncadd [#allocation6], 4294966016  ;;  %v457_v0 = vmov 0.0   ;;  %vm458_vm0 = vmmov 0   ;;  %v363_v1 = vld [vmem:[#allocation5] sm:$0xff]   ;;  %v364_v2 = vld [vmem:[#allocation5 + $0x8] sm:$0xff]   ;;  %v275_v34 = vstv %s575_s6 }
  0x36   :  { %328 = vmatprep.subr.bf16.mxu0 %v457_v0  ;;  %332 = vmatprep.mubr.msk.bf16.mxu0 %vm458_vm0, %v457_v0  ;;  %v366_v3 = vld [vmem:[#allocation7] sm:$0xff]   ;;  %v365_v4 = vld [vmem:[#allocation3] sm:$0xff]   ;;  %vm99_vm1 = vcmask 261120   ;;  %v368_v6 = vld [vmem:[#allocation7 + $0x10] sm:$0xff]   ;;  %vm290_vm2 = vcmask 7168  }
  0x37   :  { %336 = vmatprep.subr.bf16.mxu1 %v457_v0  ;;  %352 = vmatprep.mubr.msk.bf16.mxu1 %vm458_vm0, %v457_v0  ;;  %v367_v5 = vld [vmem:[#allocation7 + $0x8] sm:$0xff]   ;;  %v369_v7 = vld [vmem:[#allocation7 + $0x18] sm:$0xff]   ;;  %v370_v8 = vld [vmem:[#allocation7 + $0x20] sm:$0xff]  }
  0x38   :  { %329 = vmatpush3.bf16.msra.mxu0 %v363_v1  ;;  %337 = vmatpush3.bf16.msra.mxu1 %v366_v3  ;;  %v371_v9 = vld [vmem:[#allocation7 + $0x28] sm:$0xff]   ;;  %v372_v10 = vld [vmem:[#allocation7 + $0x30] sm:$0xff]   ;;  %v373_v11 = vld [vmem:[#allocation7 + $0x38] sm:$0xff]  }
  0x39   :  { %330 = vmatprep.subr.bf16.mxu0 %v457_v0  ;;  %338 = vmatprep.subr.bf16.mxu1 %v457_v0  ;;  %v299_v12 = vld [vmem:[%s571_s2] ss:$0 sm:$0xff] }
  0x3a   :  { %v304_v22 = vld [vmem:[%s573_s4] ss:$0 sm:$0xff] }
  0x3b   :  { %v313_v27 = vld [vmem:[%s574_s5] ss:$0 sm:$0xff] }
  0x3c   :  { %331 = vmatpush3.bf16.msra.mxu0 %v364_v2  ;;  %339 = vmatpush3.bf16.msra.mxu1 %v367_v5 }
  0x3d   :  { %340 = vmatprep.subr.bf16.mxu1 %v457_v0 }
  0x3f   :  { %333 = vmatmul.mubr.msk.bf16.vlgmr.msra.gmra.mrb[0].mxu0 %vm99_vm1, %v365_v4 }
  0x40   :  { %341 = vmatpush3.bf16.msra.mxu1 %v368_v6 }
  0x41   :  { %342 = vmatprep.subr.bf16.mxu1 %v457_v0 }
  0x44   :  { %343 = vmatpush3.bf16.msra.mxu1 %v369_v7 }
  0x45   :  { %344 = vmatprep.subr.bf16.mxu1 %v457_v0 }
  0x48   :  { %345 = vmatpush3.bf16.msra.mxu1 %v370_v8 }
  0x49   :  { %346 = vmatprep.subr.bf16.mxu1 %v457_v0 }
  0x4c   :  { %347 = vmatpush3.bf16.msra.mxu1 %v371_v9 }
  0x4d   :  { %348 = vmatprep.subr.bf16.mxu1 %v457_v0 }
  0x50   :  { %349 = vmatpush3.bf16.msra.mxu1 %v372_v10 }
  0x51   :  { %350 = vmatprep.subr.bf16.mxu1 %v457_v0 }
  0x54   :  { %351 = vmatpush3.bf16.msra.mxu1 %v373_v11 }
 0x112   :  { %v137_v13 = vpop.f32.mrb[0].mxu0 }
 0x113   :  { %v138_v14 = vadd.f32 %v299_v12, %v137_v13  ;;  %v334_v15 = vpop.f32.mrb[1].mxu0 }
 0x114   :  { %v140_v16 = vpop.f32.mrb[2].mxu0 }
 0x115   :  { %v141_v17 = vadd.f32 %v299_v12, %v140_v16  ;;  %v335_v18 = vpop.f32.mrb[3].mxu0  ;;  %v144_v19 = vmax.f32 %v138_v14, 0.0 }
 0x117   :  { %v145_v20 = vmax.f32 %v141_v17, 0.0 }
 0x119   :  { %v146_v21 = vpack.c.bf16 %v145_v20, %v144_v19 }
 0x11b   :  { %353 = vmatmul.mubr.bf16.vlgmr.msra.gmra.mrb[0].mxu1 %v146_v21 }
 0x1ee   :  { %v252_v23 = vpop.f32.mrb[0].mxu1 }
 0x1ef   :  { %v253_v24 = vadd.f32 %v304_v22, %v252_v23  ;;  %v354_v25 = vpop.f32.mrb[1].mxu1 }
 0x1f0   :  { %v255_v26 = vpop.f32.mrb[2].mxu1 }
 0x1f1   :  { %v259_v28 = vmax.f32 %v253_v24, 0.0  ;;  %v256_v29 = vadd.f32 %v304_v22, %v255_v26  ;;  %v355_v30 = vpop.f32.mrb[3].mxu1 }
 0x1f3   :  { %v260_v31 = vmax.f32 %v256_v29, 0.0  ;;  %v268_v32 = vmul.f32 %v313_v27, %v259_v28 }
 0x1f5   :  { %270 = vadd.xlane.f32.xlu0 %v268_v32  ;;  %v269_v33 = vmul.f32 %v313_v27, %v260_v31 }
 0x1f9   :  { %272 = vadd.xlane.f32.xlu0 %v269_v33 }
 0x282   :  { %v271_v35 = vpop.xlane.xlu0 %270 }
 0x283   :  { %v276_v36 = vadd.f32 %v275_v34, %v271_v35 }
 0x285   :  { %v314_v37 = vmul.f32 -1.442695, %v276_v36 }
 0x286   :  { %v273_v38 = vpop.xlane.xlu0 %272 }
 0x287   :  { %374 = vpow2.f32 %v314_v37  ;;  %v277_v39 = vadd.f32 %v275_v34, %v273_v38 }
 0x289   :  { %v315_v40 = vmul.f32 -1.442695, %v277_v39 }
 0x28b   :  { %376 = vpow2.f32 %v315_v40 }
 0x291   :  { %v375_v41 = vpop.eup %374 }
 0x292   :  { %v284_v42 = vadd.f32 1.0, %v375_v41 }
 0x294   :  { %378 = vrcp.f32 %v284_v42 }
 0x295   :  { %v377_v43 = vpop.eup %376 }
 0x296   :  { %v285_v44 = vadd.f32 1.0, %v377_v43 }
 0x298   :  { %380 = vrcp.f32 %v285_v44 }
 0x29e   :  { %v379_v45 = vpop.eup %378 }
 0x29f   :  { %291 = vst.msk [vmem:[%s576_s7] sm:$0xff] %vm290_vm2, %v379_v45 }
 0x2a2   :  { %v381_v46 = vpop.eup %380 }
 0x2a3   :  { %292 = vst.msk [vmem:[%s576_s7 + $0x8] sm:$0xff] %vm290_vm2, %v381_v46 }
 0x2a4   :  { %297 = vsyncpa [#allocation4], 1 }
 0x2a5   :  { %298 = vsyncpa [#allocation6], 1 }

</bundles_post_ra>
